<compile_context>
chip_gen: v6e
topology: v6e:2x2x1
jax: 0.10.0
libtpu: 0.0.40
codegen_flags: <defaults>
</compile_context>

<pallas_src>
import jax
import jax.numpy as jnp
from jax.experimental import pallas as pl
from jax.experimental.pallas import tpu as pltpu

_EPS = 1e-7

# Tile caps.  The mean/sum path has a tiny VMEM footprint, so these mostly
# bound per-tile latency / padding waste; the 'none' path additionally bounds
# the double-buffered output block against the per-generation VMEM budget.
_TILE_I_MAX = 512        # sublane-axis tile (pred index i), mean/sum path
_TILE_J_MAX = 4096       # lane-axis tile (target index j) -- lane-dense
_TILE_I_MAX_NONE = 1024  # i cap for the full-matrix path (before VMEM budget)


def _round_up(x, m):
    return ((x + m - 1) // m) * m


def _vmem_capacity_bytes():
    """Physical VMEM per TensorCore; conservative (v7x = 64 MiB) fallback."""
    try:
        return int(pltpu.get_tpu_info().vmem_capacity_bytes)
    except Exception:
        return 64 * 1024 * 1024


def _pick_axis(n, gran, cap, min_tiles=1):
    """Pad n to `gran`, then split into >= min_tiles tiles of size <= cap that
    exactly cover the padded extent (padding waste < num_tiles * gran)."""
    base = _round_up(n, gran)
    num = max(min_tiles, pl.cdiv(base, cap))
    tile = _round_up(pl.cdiv(base, num), gran)
    return tile, num * tile, num


def _recip(x):
    """EUP approximate reciprocal + one Newton step (~f32 accuracy)."""
    r = pl.reciprocal(x, approx=True)
    return r * (2.0 - x * r)


def _ciou_loss_tile(ifeat_ref, jfeat_ref):
    """One (tile_i, tile_j) tile of loss = 1 - ciou (constants pre-folded)."""
    # i-side columns (tile_i, 1): pred xyxy + area.
    p_x1 = ifeat_ref[:, 0:1]
    p_y1 = ifeat_ref[:, 1:2]
    p_x2 = ifeat_ref[:, 2:3]
    p_y2 = ifeat_ref[:, 3:4]
    area1 = ifeat_ref[:, 4:5]
    # j-side rows (1, tile_j): target xyxy and folded row terms.
    t_x1 = jfeat_ref[0:1, :]
    t_y1 = jfeat_ref[1:2, :]
    t_x2 = jfeat_ref[2:3, :]
    t_y2 = jfeat_ref[3:4, :]
    area2e = jfeat_ref[4:5, :]   # area2 + eps
    rho1 = jfeat_ref[5:6, :]     # 1 + center_dist / enclose_diag
    vden = jfeat_ref[6:7, :]     # 1 + v + eps
    v2 = jfeat_ref[7:8, :]       # v**2

    iw = jnp.maximum(jnp.minimum(p_x2, t_x2) - jnp.maximum(p_x1, t_x1), 0.0)
    ih = jnp.maximum(jnp.minimum(p_y2, t_y2) - jnp.maximum(p_y1, t_y1), 0.0)
    inter = iw * ih
    iou = inter * _recip(area1 + area2e - inter)
    # loss = 1 - ciou = (1 - iou) + rho + v^2 / (1 - iou + v + eps)
    #      = (rho1 - iou) + v2 * recip(vden - iou)
    return (rho1 - iou) + v2 * _recip(vden - iou)


def _ciou_matrix_kernel(ifeat_ref, jfeat_ref, out_ref):
    out_ref[...] = _ciou_loss_tile(ifeat_ref, jfeat_ref)


def _ciou_rowsum_kernel(ifeat_ref, jfeat_ref, out_ref, acc_ref):
    loss = _ciou_loss_tile(ifeat_ref, jfeat_ref)

    @pl.when(pl.program_id(1) == 0)
    def _():
        acc_ref[...] = jnp.zeros_like(acc_ref)

    acc_ref[...] += jnp.sum(loss, axis=1, keepdims=True)

    @pl.when(pl.program_id(1) == pl.num_programs(1) - 1)
    def _():
        out_ref[...] = acc_ref[...]


def ciou_loss(pred, target, reduction="mean"):
    """Pallas-TPU implementation of CIoULoss.forward(pred, target)."""
    pred = jnp.asarray(pred, jnp.float32)
    target = jnp.asarray(target, jnp.float32)

    # --- the PyTorch module's shape glue (host-side Python) -----------------
    if pred.shape[0] == 0 or target.shape[0] == 0:
        return jnp.float32(0.0)
    if pred.shape[0] != target.shape[0]:
        if target.shape[0] == 1 and pred.shape[0] > 1:
            target = jnp.tile(target, (pred.shape[0], 1))
        elif pred.shape[0] == 1 and target.shape[0] > 1:
            pred = jnp.tile(pred, (target.shape[0], 1))
        else:
            return jnp.float32(0.0)

    n = pred.shape[0]

    # --- O(n) feature precompute in XLA (hoisted out of the O(n^2) kernel) --
    px, py, pw, ph = pred[:, 0], pred[:, 1], pred[:, 2], pred[:, 3]
    tx, ty, tw, th = target[:, 0], target[:, 1], target[:, 2], target[:, 3]
    p_x1, p_y1 = px - pw * 0.5, py - ph * 0.5
    p_x2, p_y2 = px + pw * 0.5, py + ph * 0.5
    t_x1, t_y1 = tx - tw * 0.5, ty - th * 0.5
    t_x2, t_y2 = tx + tw * 0.5, ty + th * 0.5
    area1 = (p_x2 - p_x1) * (p_y2 - p_y1)
    area2 = (t_x2 - t_x1) * (t_y2 - t_y1)

    # Per-index ("j") terms of bbox_ciou, broadcast along the i axis of the
    # (n, n) pairwise matrix — exactly as the PyTorch reference does.
    center_dist = (((p_x1 + p_x2) - (t_x1 + t_x2)) * 0.5) ** 2 \
                + (((p_y1 + p_y2) - (t_y1 + t_y2)) * 0.5) ** 2
    enc_w = jnp.maximum(p_x2, t_x2) - jnp.minimum(p_x1, t_x1)
    enc_h = jnp.maximum(p_y2, t_y2) - jnp.minimum(p_y1, t_y1)
    rho = center_dist / (enc_w * enc_w + enc_h * enc_h + _EPS)
    # arctan(w/h) reproduces the PyTorch behaviour for h == 0 (inf/NaN).
    v = (4.0 / (jnp.pi ** 2)) * (jnp.arctan(tw / th) - jnp.arctan(pw / ph)) ** 2

    # Folded constants consumed by the kernel.
    area2e = area2 + _EPS
    rho1 = rho + 1.0
    vden = v + (1.0 + _EPS)
    v2 = v * v

    # --- tiling / padding ----------------------------------------------------
    # >= 2 i-tiles (when possible): lets the "parallel" i axis shard across the
    # two TensorCores on v7x; near-free (~0.35 us) on single-TC v5e/v6e.
    min_i_tiles = 2 if _round_up(n, 8) >= 16 else 1
    tile_j, n_pad_j, _ = _pick_axis(n, 128, _TILE_J_MAX)

    reduce_path = reduction in ("mean", "sum")
    if reduce_path:
        tile_i, n_pad_i, _ = _pick_axis(n, 8, _TILE_I_MAX, min_i_tiles)
        vmem_limit = 32 * 1024 * 1024
    else:
        # Cap the double-buffered output block per generation.
        big_vmem = _vmem_capacity_bytes() >= 128 * 1024 * 1024
        out_budget_elems = (4 if big_vmem else 2) * 1024 * 1024  # per buffer
        cap_i = max(8, min(_TILE_I_MAX_NONE, (out_budget_elems // tile_j) // 8 * 8))
        tile_i, n_pad_i, _ = _pick_axis(n, 8, cap_i, min_i_tiles)
        vmem_limit = (64 if big_vmem else 48) * 1024 * 1024

    # i-side features: (n_pad_i, 8) = [x1, y1, x2, y2, area1, 0, 0, 0].
    icols = jnp.stack([p_x1, p_y1, p_x2, p_y2, area1], axis=1)          # (n, 5)
    ifeat = jnp.pad(icols, ((0, n_pad_i - n), (0, 3)))

    # j-side features: (8, n_pad_j) = [x1, y1, x2, y2, area2e, rho1, vden, v2].
    # Padded columns contribute exactly 0 loss and keep reciprocals finite:
    #   zero box -> inter = 0 -> iou = 0; rho1 = v2 = 0; vden = area2e = eps.
    jrows = jnp.stack([t_x1, t_y1, t_x2, t_y2, area2e, rho1, vden, v2], axis=0)
    jfeat = jnp.pad(jrows, ((0, 0), (0, n_pad_j - n)))
    if n_pad_j > n:
        jfeat = jfeat.at[4, n:].set(_EPS)   # area2e
        jfeat = jfeat.at[6, n:].set(_EPS)   # vden

    grid = (n_pad_i // tile_i, n_pad_j // tile_j)
    in_specs = [
        pl.BlockSpec((tile_i, 8), lambda i, j: (i, 0)),
        pl.BlockSpec((8, tile_j), lambda i, j: (0, j)),
    ]

    if reduce_path:
        # Per-i-tile row sums, accumulated in VMEM scratch across the j axis
        # and written to the (tile_i, 1) output block only on the last j step.
        partial = pl.pallas_call(
            _ciou_rowsum_kernel,
            out_shape=jax.ShapeDtypeStruct((n_pad_i, 1), jnp.float32),
            grid=grid,
            in_specs=in_specs,
            out_specs=pl.BlockSpec((tile_i, 1), lambda i, j: (i, 0)),
            scratch_shapes=[pltpu.VMEM((tile_i, 1), jnp.float32)],
            compiler_params=pltpu.CompilerParams(
                dimension_semantics=("parallel", "arbitrary"),
                vmem_limit_bytes=vmem_limit),
        )(ifeat, jfeat)
        total = jnp.sum(partial[:n, 0])
        if reduction == "mean":
            # Divisor computed in f64 Python, cast once (exact for large n*n).
            total = total * jnp.float32(1.0 / (float(n) * float(n)))
        return total

    # reduction == "none" (or anything else): return the full (n, n) matrix.
    out = pl.pallas_call(
        _ciou_matrix_kernel,
        out_shape=jax.ShapeDtypeStruct((n_pad_i, n_pad_j), jnp.float32),
        grid=grid,
        in_specs=in_specs,
        out_specs=pl.BlockSpec((tile_i, tile_j), lambda i, j: (i, j)),
        compiler_params=pltpu.CompilerParams(
            dimension_semantics=("parallel", "parallel"),
            vmem_limit_bytes=vmem_limit),
    )(ifeat, jfeat)
    if n_pad_i == n and n_pad_j == n:
        return out
    return out[:n, :n]


def _ciou_loss_ref(pred, target, reduction="mean", eps=1e-7):
    """Pure-JAX reference mirroring the PyTorch code exactly."""
    def xyxy(b):
        return jnp.stack([b[:, 0] - b[:, 2] / 2, b[:, 1] - b[:, 3] / 2,
                          b[:, 0] + b[:, 2] / 2, b[:, 1] + b[:, 3] / 2], axis=1)
    b1 = xyxy(pred)
    b2 = xyxy(target)
    b1x1, b1y1, b1x2, b1y2 = b1[:, 0:1], b1[:, 1:2], b1[:, 2:3], b1[:, 3:4]
    b2x1, b2y1, b2x2, b2y2 = b2[:, 0], b2[:, 1], b2[:, 2], b2[:, 3]
    iw = jnp.maximum(jnp.minimum(b1x2, b2x2) - jnp.maximum(b1x1, b2x1), 0.0)
    ih = jnp.maximum(jnp.minimum(b1y2, b2y2) - jnp.maximum(b1y1, b2y1), 0.0)
    inter = iw * ih
    a1 = (b1x2 - b1x1) * (b1y2 - b1y1)
    a2 = (b2x2 - b2x1) * (b2y2 - b2y1)
    iou = inter / (a1 + a2 - inter + eps)
    b1cx = (b1[:, 0] + b1[:, 2]) / 2
    b1cy = (b1[:, 1] + b1[:, 3]) / 2
    b2cx = (b2[:, 0] + b2[:, 2]) / 2
    b2cy = (b2[:, 1] + b2[:, 3]) / 2
    cd = (b1cx - b2cx) ** 2 + (b1cy - b2cy) ** 2
    ex1 = jnp.minimum(b1[:, 0], b2[:, 0])
    ey1 = jnp.minimum(b1[:, 1], b2[:, 1])
    ex2 = jnp.maximum(b1[:, 2], b2[:, 2])
    ey2 = jnp.maximum(b1[:, 3], b2[:, 3])
    ediag = (ex2 - ex1) ** 2 + (ey2 - ey1) ** 2 + eps
    v = 4.0 / jnp.pi ** 2 * (jnp.arctan(target[:, 2] / target[:, 3])
                             - jnp.arctan(pred[:, 2] / pred[:, 3])) ** 2
    alpha = v / (1.0 - iou + v + eps)
    ciou = iou - cd / ediag - alpha * v
    loss = 1.0 - ciou
    if reduction == "mean":
        return loss.mean()
    if reduction == "sum":
        return loss.sum()
    return loss


if __name__ == "__main__":
    key = jax.random.PRNGKey(0)
    ok = True
    for n in (8, 37):  # aligned and non-aligned sizes (exercises padding path)
        k1, k2, k3, k4 = jax.random.split(jax.random.fold_in(key, n), 4)
        pred = jnp.concatenate(
            [jax.random.uniform(k1, (n, 2), jnp.float32, 0.0, 10.0),
             jax.random.uniform(k2, (n, 2), jnp.float32, 0.5, 5.0)], axis=1)
        target = jnp.concatenate(
            [jax.random.uniform(k3, (n, 2), jnp.float32, 0.0, 10.0),
             jax.random.uniform(k4, (n, 2), jnp.float32, 0.5, 5.0)], axis=1)
        for red in ("mean", "sum", "none"):
            out = jax.block_until_ready(ciou_loss(pred, target, reduction=red))
            ref = _ciou_loss_ref(pred, target, reduction=red)
            ok = ok and bool(jnp.allclose(out, ref, rtol=1e-4, atol=1e-5))
    assert ok
    print("KERNEL_OK")
</pallas_src>

<mosaic_0001>
module attributes {stable_mosaic.version = 11 : i64} {
  func.func @_ciou_rowsum_kernel(%arg0: i32, %arg1: i32, %arg2: memref<8x8xf32, #tpu.memory_space<vmem>>, %arg3: memref<8x128xf32, #tpu.memory_space<vmem>>, %arg4: memref<8x1xf32, #tpu.memory_space<vmem>>, %arg5: memref<8x1xf32, #tpu.memory_space<vmem>>) attributes {dimension_semantics = [#tpu.dimension_semantics<parallel>, #tpu.dimension_semantics<arbitrary>], iteration_bounds = array<i64: 1, 1>, scalar_prefetch = 0 : i64, scratch_operands = 1 : i64, tpu.core_type = #tpu.core_type<tc>, window_params = [{transform_indices = @transform_0, window_bounds = array<i64: 8, 8>}, {transform_indices = @transform_1, window_bounds = array<i64: 8, 128>}, {transform_indices = @transform_2, window_bounds = array<i64: 8, 1>}]} {
    %c0 = arith.constant 0 : index
    %c0_0 = arith.constant 0 : index
    %0 = vector.load %arg2[%c0, %c0_0] : memref<8x8xf32, #tpu.memory_space<vmem>>, vector<8x1xf32>
    %c0_1 = arith.constant 0 : index
    %c1 = arith.constant 1 : index
    %1 = vector.load %arg2[%c0_1, %c1] : memref<8x8xf32, #tpu.memory_space<vmem>>, vector<8x1xf32>
    %c0_2 = arith.constant 0 : index
    %c2 = arith.constant 2 : index
    %2 = vector.load %arg2[%c0_2, %c2] : memref<8x8xf32, #tpu.memory_space<vmem>>, vector<8x1xf32>
    %c0_3 = arith.constant 0 : index
    %c3 = arith.constant 3 : index
    %3 = vector.load %arg2[%c0_3, %c3] : memref<8x8xf32, #tpu.memory_space<vmem>>, vector<8x1xf32>
    %c0_4 = arith.constant 0 : index
    %c4 = arith.constant 4 : index
    %4 = vector.load %arg2[%c0_4, %c4] : memref<8x8xf32, #tpu.memory_space<vmem>>, vector<8x1xf32>
    %c0_5 = arith.constant 0 : index
    %c0_6 = arith.constant 0 : index
    %5 = vector.load %arg3[%c0_5, %c0_6] : memref<8x128xf32, #tpu.memory_space<vmem>>, vector<1x128xf32>
    %c1_7 = arith.constant 1 : index
    %c0_8 = arith.constant 0 : index
    %6 = vector.load %arg3[%c1_7, %c0_8] : memref<8x128xf32, #tpu.memory_space<vmem>>, vector<1x128xf32>
    %c2_9 = arith.constant 2 : index
    %c0_10 = arith.constant 0 : index
    %7 = vector.load %arg3[%c2_9, %c0_10] : memref<8x128xf32, #tpu.memory_space<vmem>>, vector<1x128xf32>
    %c3_11 = arith.constant 3 : index
    %c0_12 = arith.constant 0 : index
    %8 = vector.load %arg3[%c3_11, %c0_12] : memref<8x128xf32, #tpu.memory_space<vmem>>, vector<1x128xf32>
    %c4_13 = arith.constant 4 : index
    %c0_14 = arith.constant 0 : index
    %9 = vector.load %arg3[%c4_13, %c0_14] : memref<8x128xf32, #tpu.memory_space<vmem>>, vector<1x128xf32>
    %c5 = arith.constant 5 : index
    %c0_15 = arith.constant 0 : index
    %10 = vector.load %arg3[%c5, %c0_15] : memref<8x128xf32, #tpu.memory_space<vmem>>, vector<1x128xf32>
    %c6 = arith.constant 6 : index
    %c0_16 = arith.constant 0 : index
    %11 = vector.load %arg3[%c6, %c0_16] : memref<8x128xf32, #tpu.memory_space<vmem>>, vector<1x128xf32>
    %c7 = arith.constant 7 : index
    %c0_17 = arith.constant 0 : index
    %12 = vector.load %arg3[%c7, %c0_17] : memref<8x128xf32, #tpu.memory_space<vmem>>, vector<1x128xf32>
    %13 = vector.broadcast %2 : vector<8x1xf32> to vector<8x128xf32>
    %14 = vector.broadcast %7 : vector<1x128xf32> to vector<8x128xf32>
    %15 = arith.minimumf %13, %14 : vector<8x128xf32>
    %16 = vector.broadcast %0 : vector<8x1xf32> to vector<8x128xf32>
    %17 = vector.broadcast %5 : vector<1x128xf32> to vector<8x128xf32>
    %18 = arith.maximumf %16, %17 : vector<8x128xf32>
    %19 = arith.subf %15, %18 : vector<8x128xf32>
    %cst = arith.constant 0.000000e+00 : f32
    %20 = vector.broadcast %cst : f32 to vector<8x128xf32>
    %21 = arith.maximumf %19, %20 : vector<8x128xf32>
    %22 = vector.broadcast %3 : vector<8x1xf32> to vector<8x128xf32>
    %23 = vector.broadcast %8 : vector<1x128xf32> to vector<8x128xf32>
    %24 = arith.minimumf %22, %23 : vector<8x128xf32>
    %25 = vector.broadcast %1 : vector<8x1xf32> to vector<8x128xf32>
    %26 = vector.broadcast %6 : vector<1x128xf32> to vector<8x128xf32>
    %27 = arith.maximumf %25, %26 : vector<8x128xf32>
    %28 = arith.subf %24, %27 : vector<8x128xf32>
    %cst_18 = arith.constant 0.000000e+00 : f32
    %29 = vector.broadcast %cst_18 : f32 to vector<8x128xf32>
    %30 = arith.maximumf %28, %29 : vector<8x128xf32>
    %31 = arith.mulf %21, %30 : vector<8x128xf32>
    %32 = vector.broadcast %4 : vector<8x1xf32> to vector<8x128xf32>
    %33 = vector.broadcast %9 : vector<1x128xf32> to vector<8x128xf32>
    %34 = arith.addf %32, %33 : vector<8x128xf32>
    %35 = arith.subf %34, %31 : vector<8x128xf32>
    %36 = tpu.reciprocal %35 {approx = true} : vector<8x128xf32> -> vector<8x128xf32>
    %37 = arith.mulf %35, %36 : vector<8x128xf32>
    %cst_19 = arith.constant 2.000000e+00 : f32
    %38 = vector.broadcast %cst_19 : f32 to vector<8x128xf32>
    %39 = arith.subf %38, %37 : vector<8x128xf32>
    %40 = arith.mulf %36, %39 : vector<8x128xf32>
    %41 = arith.mulf %31, %40 : vector<8x128xf32>
    %42 = vector.broadcast %10 : vector<1x128xf32> to vector<8x128xf32>
    %43 = arith.subf %42, %41 : vector<8x128xf32>
    %44 = vector.broadcast %11 : vector<1x128xf32> to vector<8x128xf32>
    %45 = arith.subf %44, %41 : vector<8x128xf32>
    %46 = tpu.reciprocal %45 {approx = true} : vector<8x128xf32> -> vector<8x128xf32>
    %47 = arith.mulf %45, %46 : vector<8x128xf32>
    %cst_20 = arith.constant 2.000000e+00 : f32
    %48 = vector.broadcast %cst_20 : f32 to vector<8x128xf32>
    %49 = arith.subf %48, %47 : vector<8x128xf32>
    %50 = arith.mulf %46, %49 : vector<8x128xf32>
    %51 = vector.broadcast %12 : vector<1x128xf32> to vector<8x128xf32>
    %52 = arith.mulf %51, %50 : vector<8x128xf32>
    %53 = arith.addf %43, %52 : vector<8x128xf32>
    %c0_i32 = arith.constant 0 : i32
    %54 = arith.cmpi eq, %arg1, %c0_i32 : i32
    %55 = arith.extui %54 : i1 to i32
    %c0_i32_21 = arith.constant 0 : i32
    %56 = arith.cmpi ne, %55, %c0_i32_21 : i32
    scf.if %56 {
      %cst_29 = arith.constant 0.000000e+00 : f32
      %65 = vector.broadcast %cst_29 : f32 to vector<8x1xf32>
      %c0_30 = arith.constant 0 : index
      %c0_31 = arith.constant 0 : index
      %66 = vector.load %arg5[%c0_30, %c0_31] : memref<8x1xf32, #tpu.memory_space<vmem>>, vector<8x1xf32>
      tpu.vector_store %arg5[%c0_30, %c0_31], %65 {strides = array<i32>} : memref<8x1xf32, #tpu.memory_space<vmem>>, vector<8x1xf32>,
    } else {
    }
    %c0_22 = arith.constant 0 : index
    %c0_23 = arith.constant 0 : index
    %57 = vector.load %arg5[%c0_22, %c0_23] : memref<8x1xf32, #tpu.memory_space<vmem>>, vector<8x1xf32>
    %cst_24 = arith.constant dense<0.000000e+00> : vector<8xf32>
    %58 = vector.multi_reduction <add>, %53, %cst_24 [1] : vector<8x128xf32> to vector<8xf32>
    %59 = vector.shape_cast %58 : vector<8xf32> to vector<8x1xf32>
    %60 = arith.addf %57, %59 : vector<8x1xf32>
    %c0_25 = arith.constant 0 : index
    %c0_26 = arith.constant 0 : index
    %61 = vector.load %arg5[%c0_25, %c0_26] : memref<8x1xf32, #tpu.memory_space<vmem>>, vector<8x1xf32>
    tpu.vector_store %arg5[%c0_25, %c0_26], %60 {strides = array<i32>} : memref<8x1xf32, #tpu.memory_space<vmem>>, vector<8x1xf32>,
    %c0_i32_27 = arith.constant 0 : i32
    %62 = arith.cmpi eq, %arg1, %c0_i32_27 : i32
    %63 = arith.extui %62 : i1 to i32
    %c0_i32_28 = arith.constant 0 : i32
    %64 = arith.cmpi ne, %63, %c0_i32_28 : i32
    scf.if %64 {
      %c0_29 = arith.constant 0 : index
      %c0_30 = arith.constant 0 : index
      %65 = vector.load %arg5[%c0_29, %c0_30] : memref<8x1xf32, #tpu.memory_space<vmem>>, vector<8x1xf32>
      %c0_31 = arith.constant 0 : index
      %c0_32 = arith.constant 0 : index
      %66 = vector.load %arg4[%c0_31, %c0_32] : memref<8x1xf32, #tpu.memory_space<vmem>>, vector<8x1xf32>
      tpu.vector_store %arg4[%c0_31, %c0_32], %65 {strides = array<i32>} : memref<8x1xf32, #tpu.memory_space<vmem>>, vector<8x1xf32>,
    } else {
    }
    return
  }
  func.func @transform_0(%arg0: i32, %arg1: i32) -> (i32, i32) {
    %c0_i32 = arith.constant 0 : i32
    %c0_i32_0 = arith.constant 0 : i32
    return %arg0, %c0_i32 : i32, i32
  }
  func.func @transform_1(%arg0: i32, %arg1: i32) -> (i32, i32) {
    %c0_i32 = arith.constant 0 : i32
    %c0_i32_0 = arith.constant 0 : i32
    return %c0_i32, %arg1 : i32, i32
  }
  func.func @transform_2(%arg0: i32, %arg1: i32) -> (i32, i32) {
    %c0_i32 = arith.constant 0 : i32
    %c0_i32_0 = arith.constant 0 : i32
    return %arg0, %c0_i32 : i32, i32
  }
}

</mosaic_0001>

<bundles_post_ra>
// kernel: tpu_custom_call.1
= control target key start
LH: loop header
LB: loop body
LE: loop exit
PB: predicated region body
PF: predicated region fallthrough
CT: control target
= control target key end

     0   :  { %7 = vsyncpa [#allocation4], 0  ;;  %s249_s0 = inlined_call_operand.hbm [shape: f32[8,8], index: 0, kind: input, shape index: {}]   ;;  %s250_s1 = inlined_call_operand.hbm [shape: f32[8,128], index: 1, kind: input, shape index: {}]   ;;  %s251_s2 = inlined_call_operand.vmem [shape: f32[8,1], index: 2, kind: output, shape index: {}]  }
   0x1   :  { %8 = vsyncpa [#allocation6], 0  ;;  %s214_s9 = smov [#allocation3]   ;;  %s215_s11 = smov [#allocation5]  }
   0x2   :  { %s15_s10 = sshll.u32 %s214_s9, 4  ;;  %s25_s12 = sshll.u32 %s215_s11, 4  ;;  %s16_s10 = int_to_ptr.vmem [resolvable:$true] %s15_s10  ;;  %s26_s12 = int_to_ptr.vmem [resolvable:$true] %s25_s12 }
   0x3   :  { %s178_s13 = scalar_lea.vmem %s16_s10, 128  ;;  %p183_p1 = scmp.lt.s32.totalorder %s16_s10, %s16_s10 }
   0x4   :  { %p179_p0 = scmp.ne.s32.totalorder %s16_s10, %s178_s13  ;;  %p184_p2 = scmp.lt.s32.totalorder %s178_s13, %s178_s13 }
   0x6   :  { %p185_p3 = por %p184_p2, %p183_p1 }
   0x8   :  { %p186_p4 = pnand %p185_p3, %p179_p0 }
   0xa   :  { %189 = shalt.err (!%p186_p4)
}
   0xb   :  { %18 = dma.hbm_to_vmem [thread:$0]  %s249_s0, 128, %s16_s10, [#allocation4]  }
   0xc   :  { %s198_s16 = scalar_lea.vmem %s26_s12, 128  ;;  %p203_p6 = scmp.lt.s32.totalorder %s26_s12, %s26_s12 }
   0xd   :  { %p199_p5 = scmp.ne.s32.totalorder %s26_s12, %s198_s16  ;;  %p204_p7 = scmp.lt.s32.totalorder %s198_s16, %s198_s16 }
   0xf   :  { %p205_p8 = por %p204_p7, %p203_p6 }
  0x11   :  { %p206_p9 = pnand %p205_p8, %p199_p5 }
  0x13   :  { %209 = shalt.err (!%p206_p9)
}
  0x14   :  { %28 = dma.hbm_to_vmem [thread:$0]  %s250_s1, 128, %s26_s12, [#allocation6]  }
  0x15   :  { %210 = dma.done.wait [#allocation4], 128  }
  0x16   :  { %211 = vsyncadd [#allocation4], 4294967168 }
  0x17   :  { %212 = dma.done.wait [#allocation6], 128  }
  0x18   :  { %213 = vsyncadd [#allocation6], 4294967168  ;;  %v216_v0 = vmov 3   ;;  %v217_v1 = vmov 2   ;;  %v35_v2 = vld [vmem:[#allocation3] sm:$0xff]  ;;  %v218_v3 = vmov 1  }
  0x19   :  { %162 = vset.pattern.permute.xlu1 %v216_v0  ;;  %160 = vset.pattern.permute.xlu0 %v217_v1  ;;  %v219_v4 = vmov 0   ;;  %v220_v5 = vmov 4   ;;  %vm125_vm0 = vcmask 7168   ;;  %v221_v6 = vmov 0.0   ;;  %v146_v9 = vld [vmem:[#allocation5 + $0x3] ss:$0 sm:$0xff] }
  0x1a   :  { %66 = vperm.xlu1 %162, %v35_v2   ;;  %46 = vperm.xlu0 %160, %v35_v2   ;;  %126 = vst.msk [vmem:[#allocation2] sm:$0xff] %vm125_vm0, %v221_v6  ;;  %v144_v10 = vld [vmem:[#allocation5 + $0x2] ss:$0 sm:$0xff]  ;;  %v147_v11 = vld [vmem:[#allocation5 + $0x1] ss:$0 sm:$0xff] }
  0x1b   :  { %v145_v12 = vld [vmem:[#allocation5] ss:$0 sm:$0xff]  ;;  %v148_v21 = vld [vmem:[#allocation5 + $0x4] ss:$0 sm:$0xff]  ;;  %v150_v32 = vld [vmem:[#allocation5 + $0x6] ss:$0 sm:$0xff] }
  0x1c   :  { %v149_v38 = vld [vmem:[#allocation5 + $0x5] ss:$0 sm:$0xff]  ;;  %v151_v39 = vld [vmem:[#allocation5 + $0x7] ss:$0 sm:$0xff] }
  0x1e   :  { %163 = vset.pattern.permute.xlu1 %v218_v3  ;;  %161 = vset.pattern.permute.xlu0 %v219_v4 }
  0x1f   :  { %75 = vperm.xlu1 %163, %v35_v2   ;;  %55 = vperm.xlu0 %161, %v35_v2  }
  0x21   :  { %v127_v44 = vld [vmem:[#allocation2] sm:$0xff] }
  0x23   :  { %164 = vset.pattern.permute.xlu1 %v220_v5  ;;  %165 = vset.pattern.permute.xlu0 %v220_v5 }
  0x24   :  { %87 = vperm.xlu1 %164, %v35_v2  }
  0x95   :  { %v67_v7 = vpop.permute.xlu1 %66  ;;  %v47_v8 = vpop.permute.xlu0 %46 }
  0x96   :  { %v73_v15 = vmin.f32 %v67_v7, %v146_v9  ;;  %v53_v16 = vmin.f32 %v47_v8, %v144_v10 }
  0x9a   :  { %v76_v13 = vpop.permute.xlu1 %75  ;;  %v56_v14 = vpop.permute.xlu0 %55 }
  0x9b   :  { %v82_v17 = vmax.f32 %v76_v13, %v147_v11  ;;  %v62_v18 = vmax.f32 %v56_v14, %v145_v12 }
  0x9d   :  { %v83_v19 = vsub.f32 %v73_v15, %v82_v17  ;;  %v63_v20 = vsub.f32 %v53_v16, %v62_v18 }
  0x9f   :  { %v84_v22 = vmax.f32 %v83_v19, 0.0  ;;  %v64_v23 = vmax.f32 %v63_v20, 0.0  ;;  %v88_v24 = vpop.permute.xlu1 %87 }
  0xa0   :  { %v94_v25 = vadd.f32 %v148_v21, %v88_v24 }
  0xa1   :  { %v85_v26 = vmul.f32 %v84_v22, %v64_v23 }
  0xa3   :  { %v95_v27 = vsub.f32 %v94_v25, %v85_v26 }
  0xa5   :  { %166 = vrcp.f32 %v95_v27 }
  0xb2   :  { %v167_v28 = vpop.eup %166 }
  0xb3   :  { %v97_v29 = vmul.f32 %v167_v28, %v95_v27 }
  0xb5   :  { %v98_v30 = vsub.f32 2.0, %v97_v29 }
  0xb7   :  { %v99_v31 = vmul.f32 %v167_v28, %v98_v30 }
  0xb9   :  { %v100_v33 = vmul.f32 %v99_v31, %v85_v26 }
  0xbb   :  { %v110_v34 = vsub.f32 %v150_v32, %v100_v33  ;;  %v105_v41 = vsub.f32 %v149_v38, %v100_v33 }
  0xbd   :  { %168 = vrcp.f32 %v110_v34 }
  0xca   :  { %v169_v35 = vpop.eup %168 }
  0xcb   :  { %v112_v36 = vmul.f32 %v169_v35, %v110_v34 }
  0xcd   :  { %v113_v37 = vsub.f32 2.0, %v112_v36 }
  0xcf   :  { %v114_v40 = vmul.f32 %v169_v35, %v113_v37 }
  0xd1   :  { %v119_v42 = vmul.f32 %v151_v39, %v114_v40 }
  0xd3   :  { %v120_v43 = vadd.f32 %v119_v42, %v105_v41 }
  0xd5   :  { %128 = vadd.xlane.f32.xlu0 %v120_v43 }
 0x15e   :  { %v129_v45 = vpop.xlane.xlu0 %128 }
 0x15f   :  { %v130_v46 = vadd.f32 %v129_v45, %v127_v44 }
 0x161   :  { %132 = vst.msk [vmem:[#allocation2] sm:$0xff] %vm125_vm0, %v130_v46 }
 0x168   :  { %v136_v47 = vld [vmem:[#allocation2] sm:$0xff] }
 0x169   :  { %137 = vst.msk [vmem:[%s251_s2] sm:$0xff] %vm125_vm0, %v136_v47 }
 0x16a   :  { %142 = vsyncpa [#allocation4], 1 }
 0x16b   :  { %143 = vsyncpa [#allocation6], 1 }

</bundles_post_ra>
